<compile_context>
chip_gen: v5e
topology: v5e:2x2
jax: 0.10.0
libtpu: 0.0.40
codegen_flags: <defaults>
</compile_context>

<pallas_src>
import jax
import jax.numpy as jnp
from jax.experimental import pallas as pl
from jax.experimental.pallas import tpu as pltpu


def _make_res_conv_kernel(h, w, pad):
    """Fused res_conv kernel for an HxW image, lane halo width `pad`."""
    hw = h * w

    def conv_block(xflat, w2d_ref, bias, keep_l, keep_r):
        # xflat:   (C, H*W)          input activations, spatial in lanes
        # w2d_ref: (Cout, 9*Cp)      BN-folded im2col weights (Cp = C padded to 8)
        # bias:    (Cout, 1)         folded BN bias
        c = xflat.shape[0]
        cp = ((c + 7) // 8) * 8          # pad channels to a sublane tile

        if cp != c:                      # zero channel rows, built in registers
            xflat = jnp.concatenate(
                [xflat, jnp.zeros((cp - c, hw), jnp.float32)], axis=0)

        # Zero halo around the flattened image (lane-aligned concat; replaces
        # any wrapper-side jnp.pad).
        zcol = jnp.zeros((cp, pad), jnp.float32)
        xp = jnp.concatenate([zcol, xflat, zcol], axis=1)   # (Cp, 2*pad + H*W)

        # im2col in registers: one lane-shifted slice per 3x3 tap, stacked
        # along the contraction axis (tile-aligned since Cp % 8 == 0).
        patches = []
        for tap in range(9):
            ky, kx = divmod(tap, 3)
            dy, dx = ky - 1, kx - 1
            start = pad + dy * w + dx
            patch = xp[:, start:start + hw]                  # (Cp, H*W)
            # Column masks fix the row-wraparound of the +-1 lane shift
            # (row over/underflow lands in the zero halo automatically).
            if dx == -1:
                patch = jnp.where(keep_l, patch, 0.0)
            elif dx == 1:
                patch = jnp.where(keep_r, patch, 0.0)
            patches.append(patch)
        pmat = jnp.concatenate(patches, axis=0)              # (9*Cp, H*W)

        # Single MXU matmul per conv block (K = 9*Cp), folded BN bias added.
        y = jnp.dot(w2d_ref[...], pmat,
                    preferred_element_type=jnp.float32) + bias
        return jnp.where(y > 0, y, 0.01 * y)    # LeakyReLU(0.01); Dropout = id (eval)

    def kernel(x_ref, w1_ref, b1_ref, w2_ref, b2_ref, o_ref):
        # Column index masks, computed once and shared by both conv blocks.
        col = jax.lax.broadcasted_iota(jnp.int32, (1, hw), 1) % w
        keep_l = col != 0            # for dx == -1 taps
        keep_r = col != (w - 1)      # for dx == +1 taps

        x1 = conv_block(x_ref[0], w1_ref, b1_ref[...], keep_l, keep_r)
        x2 = conv_block(x1, w2_ref, b2_ref[...], keep_l, keep_r)
        o_ref[0] = x2 + x1           # residual add fused, lane-dense store

    return kernel


def _fold_conv_bn(w_hwio, conv_b, gamma, beta, mean, var, ci_pad, eps=1e-5):
    """Fold eval-mode BatchNorm into im2col conv weights/bias.

    Returns (w2d, bias) with
      w2d[co, (ky*3+kx)*ci_pad + ci] = scale[co] * w[ky, kx, ci, co]
    (zero-padded input channels) and bias = beta + (conv_b - mean) * scale,
    shape (Cout, 1).
    """
    kh, kw, ci, co = w_hwio.shape
    scale = gamma / jnp.sqrt(var + eps)                       # (co,)
    wf = w_hwio * scale                                       # fold scale into weights
    if ci_pad > ci:
        wf = jnp.pad(wf, ((0, 0), (0, 0), (0, ci_pad - ci), (0, 0)))
    w2d = jnp.transpose(wf, (3, 0, 1, 2)).reshape(co, kh * kw * ci_pad)
    bias = (beta + (conv_b - mean) * scale).reshape(co, 1)
    return w2d.astype(jnp.float32), bias.astype(jnp.float32)


def start_conv_forward(x_nchw, params, eps=1e-5):
    """Forward of start_conv (== res_conv) on an NCHW input, NCHW output."""
    n, cin, h, w = x_nchw.shape
    cout = params["w1"].shape[-1]
    hw = h * w
    pad = pl.cdiv(w + 1, 128) * 128          # lane-aligned halo (>= w+1)
    cin_p = ((cin + 7) // 8) * 8             # channels padded to sublane tile
    cmid_p = ((cout + 7) // 8) * 8

    w1t, b1 = _fold_conv_bn(params["w1"], params["b1"], params["gamma1"],
                            params["beta1"], params["mean1"], params["var1"],
                            cin_p, eps)
    w2t, b2 = _fold_conv_bn(params["w2"], params["b2"], params["gamma2"],
                            params["beta2"], params["mean2"], params["var2"],
                            cmid_p, eps)

    # NCHW with spatial flattened into lanes; pure metadata reshape (free).
    x_flat = x_nchw.reshape(n, cin, hw)

    out_flat = pl.pallas_call(
        _make_res_conv_kernel(h, w, pad),
        out_shape=jax.ShapeDtypeStruct((n, cout, hw), jnp.float32),
        grid=(n,),
        in_specs=[
            pl.BlockSpec((1, cin, hw), lambda i: (i, 0, 0)),
            pl.BlockSpec((cout, 9 * cin_p), lambda i: (0, 0)),
            pl.BlockSpec((cout, 1), lambda i: (0, 0)),
            pl.BlockSpec((cout, 9 * cmid_p), lambda i: (0, 0)),
            pl.BlockSpec((cout, 1), lambda i: (0, 0)),
        ],
        out_specs=pl.BlockSpec((1, cout, hw), lambda i: (i, 0, 0)),
        compiler_params=pltpu.CompilerParams(
            dimension_semantics=("parallel",)),
    )(x_flat, w1t, b1, w2t, b2)

    return out_flat.reshape(n, cout, h, w)   # already channel-first: free reshape


def _reference(x_nchw, params, eps=1e-5):
    """Pure-JAX eval-mode reference (for a correctness check)."""
    def block(x, w, b, gamma, beta, mean, var):
        y = jax.lax.conv_general_dilated(
            x, w, window_strides=(1, 1), padding=((1, 1), (1, 1)),
            dimension_numbers=("NCHW", "HWIO", "NCHW"),
            precision=jax.lax.Precision.HIGHEST)
        y = y + b[None, :, None, None]
        inv = gamma / jnp.sqrt(var + eps)
        y = (y - mean[None, :, None, None]) * inv[None, :, None, None] \
            + beta[None, :, None, None]
        return jnp.where(y > 0, y, 0.01 * y)

    p = params
    x1 = block(x_nchw, p["w1"], p["b1"], p["gamma1"], p["beta1"],
               p["mean1"], p["var1"])
    x2 = block(x1, p["w2"], p["b2"], p["gamma2"], p["beta2"],
               p["mean2"], p["var2"]) + x1
    return x2


def init_params(key, cin, cout):
    """Deterministic synthetic parameters matching the module's shapes."""
    ks = jax.random.split(key, 10)
    p = {}
    for blk, (ci, co), base in (("1", (cin, cout), 0), ("2", (cout, cout), 5)):
        p[f"w{blk}"] = 0.1 * jax.random.normal(ks[base + 0], (3, 3, ci, co),
                                               jnp.float32)
        p[f"b{blk}"] = 0.1 * jax.random.normal(ks[base + 1], (co,), jnp.float32)
        p[f"gamma{blk}"] = 1.0 + 0.1 * jax.random.normal(ks[base + 2], (co,),
                                                         jnp.float32)
        p[f"beta{blk}"] = 0.1 * jax.random.normal(ks[base + 3], (co,),
                                                  jnp.float32)
        p[f"mean{blk}"] = 0.1 * jax.random.normal(ks[base + 4], (co,),
                                                  jnp.float32)
        p[f"var{blk}"] = jnp.ones((co,), jnp.float32)  # running_var init = 1
    return p


if __name__ == "__main__":
    key = jax.random.PRNGKey(0)
    k_x, k_p = jax.random.split(key)

    N, CIN, COUT, H, W = 2, 4, 8, 16, 16
    x = jax.random.normal(k_x, (N, CIN, H, W), jnp.float32)   # NCHW like PyTorch
    params = init_params(k_p, CIN, COUT)

    out = jax.jit(start_conv_forward)(x, params)
    jax.block_until_ready(out)
    assert out.shape == (N, COUT, H, W), out.shape

    ref = _reference(x, params)
    rel_err = float(jnp.max(jnp.abs(out - ref)) / (jnp.max(jnp.abs(ref)) + 1e-6))
    assert rel_err < 3e-2, f"mismatch vs reference: rel_err={rel_err}"
    print("KERNEL_OK")
</pallas_src>

<mosaic_0001>
module attributes {stable_mosaic.version = 11 : i64} {
  func.func @kernel(%arg0: i32, %arg1: memref<1x4x256xf32, #tpu.memory_space<vmem>>, %arg2: memref<8x72xf32, #tpu.memory_space<vmem>>, %arg3: memref<8x1xf32, #tpu.memory_space<vmem>>, %arg4: memref<8x72xf32, #tpu.memory_space<vmem>>, %arg5: memref<8x1xf32, #tpu.memory_space<vmem>>, %arg6: memref<1x8x256xf32, #tpu.memory_space<vmem>>) attributes {dimension_semantics = [#tpu.dimension_semantics<parallel>], iteration_bounds = array<i64: 2>, scalar_prefetch = 0 : i64, scratch_operands = 0 : i64, tpu.core_type = #tpu.core_type<tc>, window_params = [{transform_indices = @transform_0, window_bounds = array<i64: 1, 4, 256>}, {pipeline_mode = #tpu.pipeline_mode<synchronous>, transform_indices = @transform_1, window_bounds = array<i64: 8, 72>}, {pipeline_mode = #tpu.pipeline_mode<synchronous>, transform_indices = @transform_2, window_bounds = array<i64: 8, 1>}, {pipeline_mode = #tpu.pipeline_mode<synchronous>, transform_indices = @transform_3, window_bounds = array<i64: 8, 72>}, {pipeline_mode = #tpu.pipeline_mode<synchronous>, transform_indices = @transform_4, window_bounds = array<i64: 8, 1>}, {transform_indices = @transform_5, window_bounds = array<i64: 1, 8, 256>}]} {
    %0 = tpu.iota {dimensions = array<i32: 1>} : vector<1x256xi32>
    %c16_i32 = arith.constant 16 : i32
    %c0_i32 = arith.constant 0 : i32
    %1 = arith.cmpi eq, %c16_i32, %c0_i32 : i32
    %c1_i32 = arith.constant 1 : i32
    %2 = arith.select %1, %c1_i32, %c16_i32 : i32
    %3 = vector.broadcast %2 : i32 to vector<1x256xi32>
    %4 = arith.remsi %0, %3 : vector<1x256xi32>
    %c0_i32_0 = arith.constant 0 : i32
    %5 = vector.broadcast %c0_i32_0 : i32 to vector<1x256xi32>
    %6 = arith.cmpi ne, %4, %5 : vector<1x256xi32>
    %c0_i32_1 = arith.constant 0 : i32
    %7 = vector.broadcast %c0_i32_1 : i32 to vector<1x256xi32>
    %8 = arith.cmpi slt, %4, %7 : vector<1x256xi32>
    %c0_i32_2 = arith.constant 0 : i32
    %9 = arith.cmpi slt, %2, %c0_i32_2 : i32
    %10 = vector.broadcast %9 : i1 to vector<1x256xi1>
    %11 = vector.broadcast %10 : vector<1x256xi1> to vector<1x256xi1>
    %12 = arith.xori %8, %11 : vector<1x256xi1>
    %13 = arith.andi %12, %6 : vector<1x256xi1>
    %14 = vector.broadcast %2 : i32 to vector<1x256xi32>
    %15 = arith.addi %4, %14 : vector<1x256xi32>
    %16 = arith.select %13, %15, %4 : vector<1x256xi1>, vector<1x256xi32>
    %c0_i32_3 = arith.constant 0 : i32
    %17 = vector.broadcast %c0_i32_3 : i32 to vector<1x256xi32>
    %18 = arith.cmpi ne, %16, %17 : vector<1x256xi32>
    %c15_i32 = arith.constant 15 : i32
    %19 = vector.broadcast %c15_i32 : i32 to vector<1x256xi32>
    %20 = arith.cmpi ne, %16, %19 : vector<1x256xi32>
    %c0 = arith.constant 0 : index
    %c0_4 = arith.constant 0 : index
    %c0_5 = arith.constant 0 : index
    %21 = vector.load %arg1[%c0, %c0_4, %c0_5] : memref<1x4x256xf32, #tpu.memory_space<vmem>>, vector<1x4x256xf32>
    %22 = vector.shape_cast %21 : vector<1x4x256xf32> to vector<4x256xf32>
    %c0_6 = arith.constant 0 : index
    %c0_7 = arith.constant 0 : index
    %23 = vector.load %arg3[%c0_6, %c0_7] : memref<8x1xf32, #tpu.memory_space<vmem>>, vector<8x1xf32>
    %cst = arith.constant 0.000000e+00 : f32
    %24 = vector.broadcast %cst : f32 to vector<4x256xf32>
    %25 = tpu.concatenate %22, %24 in 0 : vector<4x256xf32>, vector<4x256xf32> -> vector<8x256xf32>
    %cst_8 = arith.constant 0.000000e+00 : f32
    %26 = vector.broadcast %cst_8 : f32 to vector<8x128xf32>
    %27 = tpu.concatenate %26, %25, %26 in 1 : vector<8x128xf32>, vector<8x256xf32>, vector<8x128xf32> -> vector<8x512xf32>
    %28 = vector.extract_strided_slice %27 {offsets = [0, 111], sizes = [8, 256], strides = [1, 1]} : vector<8x512xf32> to vector<8x256xf32>
    %cst_9 = arith.constant 0.000000e+00 : f32
    %29 = vector.shape_cast %18 : vector<1x256xi1> to vector<1x256xi1>
    %30 = vector.broadcast %29 : vector<1x256xi1> to vector<8x256xi1>
    %31 = vector.broadcast %cst_9 : f32 to vector<8x256xf32>
    %32 = arith.select %30, %28, %31 : vector<8x256xi1>, vector<8x256xf32>
    %33 = vector.extract_strided_slice %27 {offsets = [0, 112], sizes = [8, 256], strides = [1, 1]} : vector<8x512xf32> to vector<8x256xf32>
    %34 = vector.extract_strided_slice %27 {offsets = [0, 113], sizes = [8, 256], strides = [1, 1]} : vector<8x512xf32> to vector<8x256xf32>
    %cst_10 = arith.constant 0.000000e+00 : f32
    %35 = vector.shape_cast %20 : vector<1x256xi1> to vector<1x256xi1>
    %36 = vector.broadcast %35 : vector<1x256xi1> to vector<8x256xi1>
    %37 = vector.broadcast %cst_10 : f32 to vector<8x256xf32>
    %38 = arith.select %36, %34, %37 : vector<8x256xi1>, vector<8x256xf32>
    %39 = vector.extract_strided_slice %27 {offsets = [0, 127], sizes = [8, 256], strides = [1, 1]} : vector<8x512xf32> to vector<8x256xf32>
    %cst_11 = arith.constant 0.000000e+00 : f32
    %40 = vector.shape_cast %18 : vector<1x256xi1> to vector<1x256xi1>
    %41 = vector.broadcast %40 : vector<1x256xi1> to vector<8x256xi1>
    %42 = vector.broadcast %cst_11 : f32 to vector<8x256xf32>
    %43 = arith.select %41, %39, %42 : vector<8x256xi1>, vector<8x256xf32>
    %44 = vector.extract_strided_slice %27 {offsets = [0, 128], sizes = [8, 256], strides = [1, 1]} : vector<8x512xf32> to vector<8x256xf32>
    %45 = vector.extract_strided_slice %27 {offsets = [0, 129], sizes = [8, 256], strides = [1, 1]} : vector<8x512xf32> to vector<8x256xf32>
    %cst_12 = arith.constant 0.000000e+00 : f32
    %46 = vector.shape_cast %20 : vector<1x256xi1> to vector<1x256xi1>
    %47 = vector.broadcast %46 : vector<1x256xi1> to vector<8x256xi1>
    %48 = vector.broadcast %cst_12 : f32 to vector<8x256xf32>
    %49 = arith.select %47, %45, %48 : vector<8x256xi1>, vector<8x256xf32>
    %50 = vector.extract_strided_slice %27 {offsets = [0, 143], sizes = [8, 256], strides = [1, 1]} : vector<8x512xf32> to vector<8x256xf32>
    %cst_13 = arith.constant 0.000000e+00 : f32
    %51 = vector.shape_cast %18 : vector<1x256xi1> to vector<1x256xi1>
    %52 = vector.broadcast %51 : vector<1x256xi1> to vector<8x256xi1>
    %53 = vector.broadcast %cst_13 : f32 to vector<8x256xf32>
    %54 = arith.select %52, %50, %53 : vector<8x256xi1>, vector<8x256xf32>
    %55 = vector.extract_strided_slice %27 {offsets = [0, 144], sizes = [8, 256], strides = [1, 1]} : vector<8x512xf32> to vector<8x256xf32>
    %56 = vector.extract_strided_slice %27 {offsets = [0, 145], sizes = [8, 256], strides = [1, 1]} : vector<8x512xf32> to vector<8x256xf32>
    %cst_14 = arith.constant 0.000000e+00 : f32
    %57 = vector.shape_cast %20 : vector<1x256xi1> to vector<1x256xi1>
    %58 = vector.broadcast %57 : vector<1x256xi1> to vector<8x256xi1>
    %59 = vector.broadcast %cst_14 : f32 to vector<8x256xf32>
    %60 = arith.select %58, %56, %59 : vector<8x256xi1>, vector<8x256xf32>
    %61 = tpu.concatenate %32, %33, %38, %43, %44, %49, %54, %55, %60 in 0 : vector<8x256xf32>, vector<8x256xf32>, vector<8x256xf32>, vector<8x256xf32>, vector<8x256xf32>, vector<8x256xf32>, vector<8x256xf32>, vector<8x256xf32>, vector<8x256xf32> -> vector<72x256xf32>
    %c0_15 = arith.constant 0 : index
    %c0_16 = arith.constant 0 : index
    %62 = vector.load %arg2[%c0_15, %c0_16] : memref<8x72xf32, #tpu.memory_space<vmem>>, vector<8x72xf32>
    %cst_17 = arith.constant dense<0.000000e+00> : vector<8x256xf32>
    %63 = tpu.matmul %62, %61, %cst_17 {dimension_numbers = #tpu.dot_dimension_numbers<[1], [0], [0], [1], [0, 0, 1, 1], [], []>} : vector<8x72xf32>, vector<72x256xf32>, vector<8x256xf32> -> vector<8x256xf32>
    %64 = vector.broadcast %23 : vector<8x1xf32> to vector<8x256xf32>
    %65 = arith.addf %63, %64 : vector<8x256xf32>
    %cst_18 = arith.constant 0.000000e+00 : f32
    %66 = vector.broadcast %cst_18 : f32 to vector<8x256xf32>
    %67 = arith.cmpf ogt, %65, %66 : vector<8x256xf32>
    %cst_19 = arith.constant 0.00999999977 : f32
    %68 = vector.broadcast %cst_19 : f32 to vector<8x256xf32>
    %69 = arith.mulf %68, %65 : vector<8x256xf32>
    %70 = arith.select %67, %65, %69 : vector<8x256xi1>, vector<8x256xf32>
    %c0_20 = arith.constant 0 : index
    %c0_21 = arith.constant 0 : index
    %71 = vector.load %arg5[%c0_20, %c0_21] : memref<8x1xf32, #tpu.memory_space<vmem>>, vector<8x1xf32>
    %cst_22 = arith.constant 0.000000e+00 : f32
    %72 = vector.broadcast %cst_22 : f32 to vector<8x128xf32>
    %73 = tpu.concatenate %72, %70, %72 in 1 : vector<8x128xf32>, vector<8x256xf32>, vector<8x128xf32> -> vector<8x512xf32>
    %74 = vector.extract_strided_slice %73 {offsets = [0, 111], sizes = [8, 256], strides = [1, 1]} : vector<8x512xf32> to vector<8x256xf32>
    %cst_23 = arith.constant 0.000000e+00 : f32
    %75 = vector.shape_cast %18 : vector<1x256xi1> to vector<1x256xi1>
    %76 = vector.broadcast %75 : vector<1x256xi1> to vector<8x256xi1>
    %77 = vector.broadcast %cst_23 : f32 to vector<8x256xf32>
    %78 = arith.select %76, %74, %77 : vector<8x256xi1>, vector<8x256xf32>
    %79 = vector.extract_strided_slice %73 {offsets = [0, 112], sizes = [8, 256], strides = [1, 1]} : vector<8x512xf32> to vector<8x256xf32>
    %80 = vector.extract_strided_slice %73 {offsets = [0, 113], sizes = [8, 256], strides = [1, 1]} : vector<8x512xf32> to vector<8x256xf32>
    %cst_24 = arith.constant 0.000000e+00 : f32
    %81 = vector.shape_cast %20 : vector<1x256xi1> to vector<1x256xi1>
    %82 = vector.broadcast %81 : vector<1x256xi1> to vector<8x256xi1>
    %83 = vector.broadcast %cst_24 : f32 to vector<8x256xf32>
    %84 = arith.select %82, %80, %83 : vector<8x256xi1>, vector<8x256xf32>
    %85 = vector.extract_strided_slice %73 {offsets = [0, 127], sizes = [8, 256], strides = [1, 1]} : vector<8x512xf32> to vector<8x256xf32>
    %cst_25 = arith.constant 0.000000e+00 : f32
    %86 = vector.shape_cast %18 : vector<1x256xi1> to vector<1x256xi1>
    %87 = vector.broadcast %86 : vector<1x256xi1> to vector<8x256xi1>
    %88 = vector.broadcast %cst_25 : f32 to vector<8x256xf32>
    %89 = arith.select %87, %85, %88 : vector<8x256xi1>, vector<8x256xf32>
    %90 = vector.extract_strided_slice %73 {offsets = [0, 128], sizes = [8, 256], strides = [1, 1]} : vector<8x512xf32> to vector<8x256xf32>
    %91 = vector.extract_strided_slice %73 {offsets = [0, 129], sizes = [8, 256], strides = [1, 1]} : vector<8x512xf32> to vector<8x256xf32>
    %cst_26 = arith.constant 0.000000e+00 : f32
    %92 = vector.shape_cast %20 : vector<1x256xi1> to vector<1x256xi1>
    %93 = vector.broadcast %92 : vector<1x256xi1> to vector<8x256xi1>
    %94 = vector.broadcast %cst_26 : f32 to vector<8x256xf32>
    %95 = arith.select %93, %91, %94 : vector<8x256xi1>, vector<8x256xf32>
    %96 = vector.extract_strided_slice %73 {offsets = [0, 143], sizes = [8, 256], strides = [1, 1]} : vector<8x512xf32> to vector<8x256xf32>
    %cst_27 = arith.constant 0.000000e+00 : f32
    %97 = vector.shape_cast %18 : vector<1x256xi1> to vector<1x256xi1>
    %98 = vector.broadcast %97 : vector<1x256xi1> to vector<8x256xi1>
    %99 = vector.broadcast %cst_27 : f32 to vector<8x256xf32>
    %100 = arith.select %98, %96, %99 : vector<8x256xi1>, vector<8x256xf32>
    %101 = vector.extract_strided_slice %73 {offsets = [0, 144], sizes = [8, 256], strides = [1, 1]} : vector<8x512xf32> to vector<8x256xf32>
    %102 = vector.extract_strided_slice %73 {offsets = [0, 145], sizes = [8, 256], strides = [1, 1]} : vector<8x512xf32> to vector<8x256xf32>
    %cst_28 = arith.constant 0.000000e+00 : f32
    %103 = vector.shape_cast %20 : vector<1x256xi1> to vector<1x256xi1>
    %104 = vector.broadcast %103 : vector<1x256xi1> to vector<8x256xi1>
    %105 = vector.broadcast %cst_28 : f32 to vector<8x256xf32>
    %106 = arith.select %104, %102, %105 : vector<8x256xi1>, vector<8x256xf32>
    %107 = tpu.concatenate %78, %79, %84, %89, %90, %95, %100, %101, %106 in 0 : vector<8x256xf32>, vector<8x256xf32>, vector<8x256xf32>, vector<8x256xf32>, vector<8x256xf32>, vector<8x256xf32>, vector<8x256xf32>, vector<8x256xf32>, vector<8x256xf32> -> vector<72x256xf32>
    %c0_29 = arith.constant 0 : index
    %c0_30 = arith.constant 0 : index
    %108 = vector.load %arg4[%c0_29, %c0_30] : memref<8x72xf32, #tpu.memory_space<vmem>>, vector<8x72xf32>
    %cst_31 = arith.constant dense<0.000000e+00> : vector<8x256xf32>
    %109 = tpu.matmul %108, %107, %cst_31 {dimension_numbers = #tpu.dot_dimension_numbers<[1], [0], [0], [1], [0, 0, 1, 1], [], []>} : vector<8x72xf32>, vector<72x256xf32>, vector<8x256xf32> -> vector<8x256xf32>
    %110 = vector.broadcast %71 : vector<8x1xf32> to vector<8x256xf32>
    %111 = arith.addf %109, %110 : vector<8x256xf32>
    %cst_32 = arith.constant 0.000000e+00 : f32
    %112 = vector.broadcast %cst_32 : f32 to vector<8x256xf32>
    %113 = arith.cmpf ogt, %111, %112 : vector<8x256xf32>
    %cst_33 = arith.constant 0.00999999977 : f32
    %114 = vector.broadcast %cst_33 : f32 to vector<8x256xf32>
    %115 = arith.mulf %114, %111 : vector<8x256xf32>
    %116 = arith.select %113, %111, %115 : vector<8x256xi1>, vector<8x256xf32>
    %117 = arith.addf %116, %70 : vector<8x256xf32>
    %c0_34 = arith.constant 0 : index
    %c0_35 = arith.constant 0 : index
    %c0_36 = arith.constant 0 : index
    %118 = vector.load %arg6[%c0_34, %c0_35, %c0_36] : memref<1x8x256xf32, #tpu.memory_space<vmem>>, vector<1x8x256xf32>
    %119 = vector.shape_cast %118 : vector<1x8x256xf32> to vector<8x256xf32>
    %120 = vector.shape_cast %117 : vector<8x256xf32> to vector<1x8x256xf32>
    tpu.vector_store %arg6[%c0_34, %c0_35, %c0_36], %120 {strides = array<i32>} : memref<1x8x256xf32, #tpu.memory_space<vmem>>, vector<1x8x256xf32>,
    return
  }
  func.func @transform_0(%arg0: i32) -> (i32, i32, i32) {
    %c0_i32 = arith.constant 0 : i32
    %c0_i32_0 = arith.constant 0 : i32
    %c0_i32_1 = arith.constant 0 : i32
    return %arg0, %c0_i32, %c0_i32_0 : i32, i32, i32
  }
  func.func @transform_1(%arg0: i32) -> (i32, i32) {
    %c0_i32 = arith.constant 0 : i32
    %c0_i32_0 = arith.constant 0 : i32
    %c0_i32_1 = arith.constant 0 : i32
    return %c0_i32, %c0_i32_0 : i32, i32
  }
  func.func @transform_2(%arg0: i32) -> (i32, i32) {
    %c0_i32 = arith.constant 0 : i32
    %c0_i32_0 = arith.constant 0 : i32
    %c0_i32_1 = arith.constant 0 : i32
    return %c0_i32, %c0_i32_0 : i32, i32
  }
  func.func @transform_3(%arg0: i32) -> (i32, i32) {
    %c0_i32 = arith.constant 0 : i32
    %c0_i32_0 = arith.constant 0 : i32
    %c0_i32_1 = arith.constant 0 : i32
    return %c0_i32, %c0_i32_0 : i32, i32
  }
  func.func @transform_4(%arg0: i32) -> (i32, i32) {
    %c0_i32 = arith.constant 0 : i32
    %c0_i32_0 = arith.constant 0 : i32
    %c0_i32_1 = arith.constant 0 : i32
    return %c0_i32, %c0_i32_0 : i32, i32
  }
  func.func @transform_5(%arg0: i32) -> (i32, i32, i32) {
    %c0_i32 = arith.constant 0 : i32
    %c0_i32_0 = arith.constant 0 : i32
    %c0_i32_1 = arith.constant 0 : i32
    return %arg0, %c0_i32, %c0_i32_0 : i32, i32, i32
  }
}

</mosaic_0001>

<bundles_post_ra>
// kernel: start_conv_forward.1
= control target key start
LH: loop header
LB: loop body
LE: loop exit
PB: predicated region body
PF: predicated region fallthrough
CT: control target
= control target key end

     0   :  { %s758_s18 = smov 0   ;;  %s997_s0 = inlined_call_operand.vmem [shape: f32[2,4,256], index: 0, kind: input, shape index: {}]   ;;  %s998_s1 = inlined_call_operand.vmem [shape: f32[8,72], index: 1, kind: input, shape index: {}]   ;;  %s999_s2 = inlined_call_operand.vmem [shape: f32[8,1], index: 2, kind: input, shape index: {}]   ;;  %s1000_s3 = inlined_call_operand.vmem [shape: f32[8,72], index: 3, kind: input, shape index: {}]   ;;  %s1001_s4 = inlined_call_operand.vmem [shape: f32[8,1], index: 4, kind: input, shape index: {}]   ;;  %s1002_s5 = inlined_call_operand.vmem [shape: f32[2,8,256], index: 5, kind: output, shape index: {}]  }
   0x1 LB: > { %s627_s19 = sadd.s32 4294967295, %s716_s18   ;;  %p631_p0 = scmp.ge.s32.totalorder %s716_s18, 1  ;;  %s716_s18 = sphi %s758_s18, %s15_s18  }
   0x2   : > { %p187_p1 = scmp.lt.s32.totalorder %s716_s18, 3 }
   0x4   : > { %p188_p2 = pnand %p631_p0, %p187_p1 }
   0x5   : > { %s719_s20 = smov (!%p188_p2), 111   ;;  %p215_p3 = scmp.lt.s32.totalorder (!%p188_p2), %s627_s19, 1 }
   0x6   : > { %191 = sbr.rel (%p188_p2) target bundleno = 617 (0x269), region = 40  ;;  %s720_s21 = smov (!%p188_p2), 112  }
   0x7   : > { %s721_s26 = smov (!%p188_p2), 113   ;;  %s722_s27 = smov (!%p188_p2), 127  }
   0x8   : > { %s723_s28 = smov (!%p188_p2), 1   ;;  %s724_s29 = smov (!%p188_p2), 15  }
   0x9   : > { %s725_s30 = smov (!%p188_p2), 16   ;;  %s726_s6 = smov (!%p188_p2), 17  }
   0xb   : > { %v718_v0 = vmov 0.0   ;;  %s1012_s19 = smov (!%p215_p3, %s627_s19), 1  ;;  %vm264_vm0 = vcmask 1043456   ;;  %v225_v11 = vlaneseq  ;;  %vm349_vm1 = vcmask 908288   ;;  %v257_v39 = vld [vmem:[%s999_s2] sm:$0xff] }
   0xc   : > { %347 = vrot.lane.b32.xlu1 %v718_v0, %s719_s20  ;;  %371 = vrot.lane.b32.xlu2 %v718_v0, %s720_s21  ;;  %s668_s22 = sshll.u32 %s1012_s19, 3  ;;  %vm373_vm4 = vcmask 916480   ;;  %vm336_vm5 = vcmask 924672   ;;  %vm323_vm8 = vcmask 1039360   ;;  %v727_v42 = vmov 0   ;;  %v378_v57 = vld [vmem:[%s998_s1] sm:$0xff] }
   0xd   : > { %s219_s25 = scalar_lea.vmem %s997_s0, %s668_s22  ;;  %v226_v13 = vand.u32 127, %v225_v11  ;;  %698 = vset.pattern.permute.xlu1 %v727_v42  ;;  %709 = vset.pattern.permute.xlu0 %v727_v42  ;;  %vm310_vm9 = vcmask 7168   ;;  %vm297_vm10 = vcmask 121856   ;;  %vm362_vm11 = vcmask 130048   ;;  %s669_s15 = sshll.u32 %s1012_s19, 4 }
   0xe   : > { %v256_v1 = vld [vmem:[%s219_s25] sm:$0xff]  ;;  %vm280_vm12 = vcmask 138240   ;;  %vm384_vm13 = vcmask 588800  }
   0xf   : > { %259 = vst [vmem:[#allocation1] ss:$2 sm:$0xff] %v256_v1  ;;  %v227_v14 = vadd.s32 128, %v226_v13  ;;  %v232_v18 = vand.u32 15, %v226_v13 }
  0x11   : > { %v239_v19 = vand.u32 15, %v227_v14  ;;  %vm808_vm2 = vcmp.ne.s32.totalorder %v232_v18, 15  ;;  %vm830_vm6 = vcmp.ne.s32.totalorder %v232_v18, 0 }
  0x13   : > { %vm812_vm3 = vcmp.ne.s32.totalorder %v239_v19, 15  ;;  %vm834_vm7 = vcmp.ne.s32.totalorder %v239_v19, 0 }
  0x14   : > { %334 = vrot.lane.b32.xlu1 %v718_v0, %s721_s26 }
  0x16   : > { %v775_v2 = vld.sshfl [vmem:[#allocation1] sm:$0xff pattern:$0x75316420]  ;;  %v777_v3 = vld.sshfl [vmem:[#allocation1 + $0x8] sm:$0xff pattern:$0x75316420] }
  0x17   : > { %v265_v4 = vsel %vm264_vm0, %v775_v2, 0.0  ;;  %v266_v5 = vsel %vm264_vm0, %v777_v3, 0.0 }
  0x18   : > { %343 = vrot.lane.b32.xlu0 %v265_v4, %s719_s20  ;;  %v688_v6 = vpack.i.bf16 %v266_v5, %v265_v4  ;;  %330 = vrot.lane.b32.xlu2 %v265_v4, %s721_s26  ;;  %v693_v7 = vpack.i.bf16 %v265_v4, %v718_v0 }
  0x1c   : > { %689 = vrot.lane.b32.xlu1 %v688_v6, %s720_s21 }
  0x20   : > { %345 = vrot.lane.b32.xlu0 %v266_v5, %s719_s20  ;;  %317 = vrot.lane.b32.xlu2 %v265_v4, %s722_s27 }
  0x24   : > { %321 = vrot.lane.b32.xlu1 %v718_v0, %s722_s27 }
  0x28   : > { %332 = vrot.lane.b32.xlu0 %v266_v5, %s721_s26  ;;  %304 = vrot.lane.b32.xlu2 %v718_v0, %s723_s28 }
  0x2c   : > { %308 = vrot.lane.b32.xlu1 %v266_v5, %s723_s28 }
  0x30   : > { %319 = vrot.lane.b32.xlu0 %v266_v5, %s722_s27  ;;  %291 = vrot.lane.b32.xlu2 %v718_v0, %s724_s29 }
  0x34   : > { %295 = vrot.lane.b32.xlu1 %v266_v5, %s724_s29 }
  0x38   : > { %306 = vrot.lane.b32.xlu0 %v265_v4, %s723_s28  ;;  %694 = vrot.lane.b32.xlu2 %v693_v7, %s725_s30 }
  0x3c   : > { %274 = vrot.lane.b32.xlu1 %v718_v0, %s726_s6 }
  0x40   : > { %293 = vrot.lane.b32.xlu0 %v265_v4, %s724_s29  ;;  %276 = vrot.lane.b32.xlu2 %v265_v4, %s726_s6 }
  0x44   : > { %381 = vperm.xlu1 %698, %v257_v39  }
  0x48   : > { %360 = vrot.lane.b32.xlu0 %v266_v5, %s725_s30 }
  0x50   : > { %278 = vrot.lane.b32.xlu0 %v266_v5, %s726_s6 }
  0x66   : > { %v802_v8 = vpop.permute.xlu2 %371 }
  0x72   : > { %v331_v10 = vpop.permute.xlu2 %330 }
  0x7a   : > { %v318_v15 = vpop.permute.xlu2 %317 }
  0x7e   : > { %v804_v9 = vpop.permute.xlu1 %347 }
  0x82   : > { %v820_v28 = vpop.permute.xlu2 %304 }
  0x86   : > { %v806_v12 = vpop.permute.xlu1 %334 }
  0x8a   : > { %v344_v16 = vpop.permute.xlu0 %343  ;;  %v845_v36 = vpop.permute.xlu2 %291 }
  0x8e   : > { %v690_v17 = vpop.permute.xlu1 %689 }
  0x8f   : > { %v691_v20 = vunpack.i.l.bf16 %v690_v17  ;;  %v692_v21 = vunpack.i.h.bf16 %v690_v17 }
  0x91   : > { %v374_v27 = vsel %vm373_vm4, %v691_v20, %v692_v21  ;;  %v375_v30 = vsel %vm373_vm4, %v692_v21, %v802_v8 }
  0x92   : > { %v346_v24 = vpop.permute.xlu0 %345  ;;  %v861_v43 = vpop.permute.xlu2 %694 }
  0x93   : > { %v350_v25 = vsel %vm349_vm1, %v344_v16, %v346_v24  ;;  %v351_v26 = vsel %vm349_vm1, %v346_v24, %v804_v9  ;;  %v697_v48 = vunpack.i.h.bf16 %v861_v43  ;;  %v696_v49 = vunpack.i.l.bf16 %v861_v43 }
  0x94   : > { %636 = vmatpush.msk.msra.mxu0 %vm808_vm2, %v350_v25  ;;  %644 = vmatpush.msk.msra.mxu1 %vm812_vm3, %v351_v26 }
  0x95   : > { %v363_v55 = vsel %vm362_vm11, %v696_v49, %v697_v48 }
  0x96   : > { %v826_v29 = vpop.permute.xlu1 %321  ;;  %416 = vmatpush.msra.mxu1 %v375_v30  ;;  %396 = vmatpush.msra.mxu0 %v374_v27 }
  0x9a   : > { %v333_v33 = vpop.permute.xlu0 %332  ;;  %v277_v50 = vpop.permute.xlu2 %276 }
  0x9b   : > { %v337_v34 = vsel %vm336_vm5, %v331_v10, %v333_v33  ;;  %v338_v35 = vsel %vm336_vm5, %v333_v33, %v806_v12  ;;  %v434_v10 = vld [vmem:[%s1001_s4] sm:$0xff] }
  0x9c   : > { %637 = vmatpush.msk.msra.mxu0 %vm830_vm6, %v337_v34  ;;  %645 = vmatpush.msk.msra.mxu1 %vm834_vm7, %v338_v35 }
  0x9e   : > { %v309_v37 = vpop.permute.xlu1 %308 }
  0xa2   : > { %v320_v38 = vpop.permute.xlu0 %319 }
  0xa3   : > { %v324_v40 = vsel %vm323_vm8, %v318_v15, %v320_v38  ;;  %v325_v41 = vsel %vm323_vm8, %v320_v38, %v826_v29 }
  0xa4   : > { %638 = vmatpush.msk.msra.mxu0 %vm808_vm2, %v324_v40  ;;  %646 = vmatpush.msk.msra.mxu1 %vm812_vm3, %v325_v41 }
  0xa6   : > { %639 = vmatpush.msk.msra.mxu0 %vm264_vm0, %v775_v2  ;;  %647 = vmatpush.msk.msra.mxu1 %vm264_vm0, %v777_v3  ;;  %v296_v44 = vpop.permute.xlu1 %295 }
  0xaa   : > { %v307_v45 = vpop.permute.xlu0 %306 }
  0xab   : > { %v311_v46 = vsel %vm310_vm9, %v820_v28, %v307_v45  ;;  %v312_v47 = vsel %vm310_vm9, %v307_v45, %v309_v37 }
  0xac   : > { %640 = vmatpush.msk.msra.mxu0 %vm830_vm6, %v311_v46  ;;  %648 = vmatpush.msk.msra.mxu1 %vm834_vm7, %v312_v47 }
  0xae   : > { %v872_v52 = vpop.permute.xlu1 %274 }
  0xaf   : > { %v281_v56 = vsel %vm280_vm12, %v872_v52, %v277_v50 }
  0xb2   : > { %v294_v51 = vpop.permute.xlu0 %293 }
  0xb3   : > { %v298_v53 = vsel %vm297_vm10, %v845_v36, %v294_v51  ;;  %v299_v54 = vsel %vm297_vm10, %v294_v51, %v296_v44  ;;  %v513_v44 = vld [vmem:[%s1000_s3] sm:$0xff] }
  0xb4   : > { %641 = vmatpush.msk.msra.mxu0 %vm808_vm2, %v298_v53  ;;  %649 = vmatpush.msk.msra.mxu1 %vm812_vm3, %v299_v54 }
  0xb6   : > { %402 = vmatpush.msra.mxu0 %v363_v55  ;;  %v382_v62 = vpop.permute.xlu1 %381 }
  0xb8   : > { %642 = vmatpush.msk.msra.mxu0 %vm830_vm6, %v281_v56 }
  0xb9   : > { %643 = vmatmul.msk.f32.vlgmr.msra.gmra.mxu0 %vm384_vm13, %v378_v57 }
  0xba   : > { %v361_v58 = vpop.permute.xlu0 %360 }
  0xbb   : > { %v364_v59 = vsel %vm362_vm11, %v697_v48, %v361_v58 }
  0xbc   : > { %422 = vmatpush.msra.mxu1 %v364_v59 }
  0xc2   : > { %v279_v60 = vpop.permute.xlu0 %278 }
  0xc3   : > { %v282_v61 = vsel %vm280_vm12, %v277_v50, %v279_v60 }
  0xc4   : > { %650 = vmatpush.msk.msra.mxu1 %vm834_vm7, %v282_v61 }
  0xc5   : > { %651 = vmatmul.msk.f32.vlgmr.msra.gmra.mxu1 %vm384_vm13, %v378_v57 }
 0x136   : > { %v405_v63 = vpop.f32.mrf.mxu0 }
 0x137   : > { %v406_v0 = vadd.f32 %v405_v63, %v382_v62 }
 0x139   : > { %vm428_vm14 = vcmp.gt.f32.partialorder %v406_v0, 0.0  ;;  %v430_v1 = vmul.f32 0.01, %v406_v0 }
 0x13b   : > { %v897_v2 = vsel %vm428_vm14, %v406_v0, %v430_v1 }
 0x13c   : > { %487 = vrot.lane.b32.xlu2 %v897_v2, %s719_s20 }
 0x142   : > { %v425_v3 = vpop.f32.mrf.mxu1 }
 0x143   : > { %v426_v4 = vadd.f32 %v425_v3, %v382_v62 }
 0x144   : > { %477 = vrot.lane.b32.xlu2 %v897_v2, %s721_s26 }
 0x145   : > { %vm429_vm15 = vcmp.gt.f32.partialorder %v426_v4, 0.0  ;;  %v431_v5 = vmul.f32 0.01, %v426_v4 }
 0x147   : > { %v903_v6 = vsel %vm429_vm15, %v426_v4, %v431_v5 }
 0x148   : > { %489 = vrot.lane.b32.xlu0 %v903_v6, %s719_s20  ;;  %v699_v7 = vpack.i.bf16 %v903_v6, %v897_v2  ;;  %s224_s20 = scalar_lea.vmem %s1002_s5, %s669_s15 }
 0x14a   : > { %700 = vrot.lane.b32.xlu1 %v699_v7, %s720_s21 }
 0x14c   : > { %469 = vrot.lane.b32.xlu2 %v903_v6, %s722_s27 }
 0x150   : > { %479 = vrot.lane.b32.xlu0 %v903_v6, %s721_s26 }
 0x152   : > { %467 = vrot.lane.b32.xlu1 %v897_v2, %s722_s27 }
 0x154   : > { %447 = vrot.lane.b32.xlu2 %v897_v2, %s724_s29 }
 0x158   : > { %457 = vrot.lane.b32.xlu0 %v897_v2, %s723_s28 }
 0x15a   : > { %459 = vrot.lane.b32.xlu1 %v903_v6, %s723_s28 }
 0x15c   : > { %437 = vrot.lane.b32.xlu2 %v897_v2, %s726_s6 }
 0x160   : > { %449 = vrot.lane.b32.xlu0 %v903_v6, %s724_s29 }
 0x162   : > { %705 = vrot.lane.b32.xlu1 %v699_v7, %s725_s30 }
 0x168   : > { %439 = vrot.lane.b32.xlu0 %v903_v6, %s726_s6 }
 0x16a   : > { %516 = vperm.xlu1 %698, %v434_v10  }
 0x196   : > { %v488_v11 = vpop.permute.xlu2 %487 }
 0x19e   : > { %v478_v13 = vpop.permute.xlu2 %477 }
 0x1a6   : > { %v470_v24 = vpop.permute.xlu2 %469 }
 0x1ba   : > { %v490_v14 = vpop.permute.xlu0 %489 }
 0x1bb   : > { %v491_v15 = vsel %vm349_vm1, %v488_v11, %v490_v14  ;;  %v492_v16 = vsel %vm349_vm1, %v490_v14, %v804_v9 }
 0x1bc   : > { %v701_v17 = vpop.permute.xlu1 %700  ;;  %652 = vmatpush.msk.msra.mxu2 %vm808_vm2, %v491_v15  ;;  %659 = vmatpush.msk.msra.mxu3 %vm812_vm3, %v492_v16 }
 0x1bd   : > { %v703_v18 = vunpack.i.h.bf16 %v701_v17  ;;  %v702_v19 = vunpack.i.l.bf16 %v701_v17 }
 0x1bf   : > { %v509_v20 = vsel %vm373_vm4, %v702_v19, %v703_v18  ;;  %v510_v21 = vsel %vm373_vm4, %v703_v18, %v802_v8  ;;  %v472_v8 = vsel %vm323_vm8, %v470_v24, %v826_v29 }
 0x1c0   : > { %530 = vmatpush.msra.mxu2 %v509_v20  ;;  %550 = vmatpush.msra.mxu3 %v510_v21 }
 0x1c2   : > { %v480_v25 = vpop.permute.xlu0 %479 }
 0x1c3   : > { %v481_v9 = vsel %vm336_vm5, %v478_v13, %v480_v25  ;;  %v482_v26 = vsel %vm336_vm5, %v480_v25, %v806_v12  ;;  %v448_v12 = vpop.permute.xlu2 %447 }
 0x1c4   : > { %v468_v27 = vpop.permute.xlu1 %467  ;;  %653 = vmatpush.msk.msra.mxu2 %vm830_vm6, %v481_v9  ;;  %660 = vmatpush.msk.msra.mxu3 %vm834_vm7, %v482_v26  ;;  %v451_v29 = vsel %vm297_vm10, %v845_v36, %v448_v12 }
 0x1c5   : > { %v471_v30 = vsel %vm323_vm8, %v468_v27, %v470_v24 }
 0x1c6   : > { %654 = vmatpush.msk.msra.mxu2 %vm808_vm2, %v471_v30  ;;  %661 = vmatpush.msk.msra.mxu3 %vm812_vm3, %v472_v8 }
 0x1c8   : > { %533 = vmatpush.msra.mxu2 %v897_v2  ;;  %553 = vmatpush.msra.mxu3 %v903_v6 }
 0x1ca   : > { %v458_v33 = vpop.permute.xlu0 %457 }
 0x1cb   : > { %v461_v34 = vsel %vm310_vm9, %v820_v28, %v458_v33  ;;  %v438_v42 = vpop.permute.xlu2 %437 }
 0x1cc   : > { %v460_v35 = vpop.permute.xlu1 %459  ;;  %655 = vmatpush.msk.msra.mxu2 %vm830_vm6, %v461_v34  ;;  %v441_v23 = vsel %vm280_vm12, %v872_v52, %v438_v42 }
 0x1cd   : > { %v462_v37 = vsel %vm310_vm9, %v458_v33, %v460_v35 }
 0x1ce   : > { %656 = vmatpush.msk.msra.mxu2 %vm808_vm2, %v451_v29  ;;  %662 = vmatpush.msk.msra.mxu3 %vm834_vm7, %v462_v37 }
 0x1d2   : > { %v450_v38 = vpop.permute.xlu0 %449 }
 0x1d3   : > { %v452_v39 = vsel %vm297_vm10, %v448_v12, %v450_v38 }
 0x1d4   : > { %v706_v40 = vpop.permute.xlu1 %705  ;;  %663 = vmatpush.msk.msra.mxu3 %vm812_vm3, %v452_v39 }
 0x1d5   : > { %v708_v28 = vunpack.i.h.bf16 %v706_v40  ;;  %v707_v41 = vunpack.i.l.bf16 %v706_v40 }
 0x1d7   : > { %v501_v36 = vsel %vm362_vm11, %v696_v49, %v707_v41  ;;  %v502_v22 = vsel %vm362_vm11, %v707_v41, %v708_v28 }
 0x1d8   : > { %536 = vmatpush.msra.mxu2 %v501_v36  ;;  %556 = vmatpush.msra.mxu3 %v502_v22 }
 0x1da   : > { %657 = vmatpush.msk.msra.mxu2 %vm830_vm6, %v441_v23  ;;  %v440_v45 = vpop.permute.xlu0 %439 }
 0x1db   : > { %658 = vmatmul.msk.f32.vlgmr.msra.gmra.mxu2 %vm384_vm13, %v513_v44  ;;  %v442_v43 = vsel %vm280_vm12, %v438_v42, %v440_v45 }
 0x1dc   : > { %664 = vmatpush.msk.msra.mxu3 %vm834_vm7, %v442_v43  ;;  %v517_v46 = vpop.permute.xlu1 %516 }
 0x1dd   : > { %665 = vmatmul.msk.f32.vlgmr.msra.gmra.mxu3 %vm384_vm13, %v513_v44 }
 0x25e   : > { %v539_v47 = vpop.f32.mrf.mxu2 }
 0x25f   : > { %v540_v48 = vadd.f32 %v539_v47, %v517_v46 }
 0x260   : > { %v559_v49 = vpop.f32.mrf.mxu3 }
 0x261   : > { %vm562_vm0 = vcmp.gt.f32.partialorder %v540_v48, 0.0  ;;  %v564_v50 = vmul.f32 0.01, %v540_v48  ;;  %v560_v51 = vadd.f32 %v559_v49, %v517_v46 }
 0x263   : > { %v566_v31 = vsel %vm562_vm0, %v540_v48, %v564_v50  ;;  %vm563_vm1 = vcmp.gt.f32.partialorder %v560_v51, 0.0  ;;  %v565_v52 = vmul.f32 0.01, %v560_v51 }
 0x264   : > { %v568_v32 = vadd.f32 %v566_v31, %v897_v2 }
 0x265   : > { %v567_v53 = vsel %vm563_vm1, %v560_v51, %v565_v52 }
 0x266   : > { %570 = vst [vmem:[%s224_s20] sm:$0xff] %v568_v32  ;;  %v569_v54 = vadd.f32 %v567_v53, %v903_v6 }
 0x268   : > { %571 = vst [vmem:[%s224_s20 + $0x8] sm:$0xff] %v569_v54 }
 0x269 PF: > { %s15_s18 = sadd.s32 1, %s716_s18  }
 0x26a   : > { %p12_p4 = scmp.ge.s32.totalorder %s15_s18, 4  }
 0x26c   :  { %14 = sbr.rel (!%p12_p4) target bundleno = 1 (0x1), region = 70 }

</bundles_post_ra>
